<compile_context>
chip_gen: v7x
topology: tpu7x:2x2x1
jax: 0.10.0
libtpu: 0.0.40
codegen_flags: <defaults>
</compile_context>

<pallas_src>
import math

import jax
import jax.numpy as jnp
from jax.experimental import pallas as pl
from jax.experimental.pallas import tpu as pltpu


# ----------------------------------------------------------------------------
# Fused kernel: ChebConv(+bias,ReLU) + Linear1(BN folded) + ReLU
#               + Linear2 + softmax      (single invocation, no grid)
# ----------------------------------------------------------------------------
def chebnet_fused_kernel(x_ref, g_ref, gb_ref, w1_ref, b1_ref, w2_ref, b2_ref,
                         feat_ref, pred_ref):
    # ChebConv for all batches in one lane-dense MXU contraction:
    #   feat[b, n*Cout+o] = sum_{m,i} x[b, m*Cin+i] * G[m*Cin+i, n*Cout+o]
    feat = jnp.dot(x_ref[...], g_ref[...], preferred_element_type=jnp.float32)
    feat = jnp.maximum(feat + gb_ref[...], 0.0)            # + bias, ReLU
    feat_ref[...] = feat                                   # (B, N*Cout) lane-dense

    # fc1 (eval-mode BatchNorm already folded into w1/b1) + ReLU.
    h = jnp.dot(feat, w1_ref[...], preferred_element_type=jnp.float32) + b1_ref[...]
    h = jnp.maximum(h, 0.0)
    # TODO(synk): dropout is identity in eval mode; training-mode stochastic
    # dropout mask / batch-statistics BatchNorm are not implemented here.

    # fc2 + softmax(dim=1)  (exact divide; denominator is only (B, 1)).
    logits = jnp.dot(h, w2_ref[...], preferred_element_type=jnp.float32) + b2_ref[...]
    m = jnp.max(logits, axis=-1, keepdims=True)
    e = jnp.exp(logits - m)
    pred_ref[...] = e / jnp.sum(e, axis=-1, keepdims=True)


def chebnet_forward(params, de_data, graph):
    """de_data (B,N,Cin), graph (N,N) -> (output_feature (B,N*Cout), class_pred (B,C))."""
    B, N, Cin = de_data.shape
    Kp1, Cin_w, Cout = params["conv1_w"].shape
    assert Cin_w == Cin
    F1, F2 = params["fc1_w"].shape
    C = params["fc2_w"].shape[1]
    # conv output N*hid_c must match fc1 input width chan_num*out_c.
    assert F1 == N * Cout, "ChebNet forward requires hid_c == out_c"

    # ---- graph-dependent preprocessing (hoisted out of the kernel) ----------
    # Unnormalized Laplacian L = D - A (ChebConv default: normalize=False).
    lap = jnp.diag(jnp.sum(graph, axis=-1)) - graph
    t = [jnp.eye(N, dtype=jnp.float32)]                    # T_0 = I
    if Kp1 > 1:
        t.append(lap)                                      # T_1 = L
    for _ in range(2, Kp1):                                # T_k = 2 L T_{k-1} - T_{k-2}
        t.append(2.0 * (lap @ t[-1]) - t[-2])
    T = jnp.stack(t)                                       # (K+1, N, N)

    # Combined ChebConv operator; its (n, o) column ordering is exactly the
    # torch `.view(B, -1)` flatten, so no in-kernel flatten is needed.
    G = jnp.einsum("knm,kio->mino", T, params["conv1_w"]).reshape(N * Cin, N * Cout)
    g_bias = jnp.tile(params["conv1_b"], (1, N))           # (1, N*Cout)

    # ---- fold eval-mode BatchNorm1d into fc1 ---------------------------------
    scale = params["bn_gamma"] * jax.lax.rsqrt(params["bn_var"] + 1e-5)   # (1, F2)
    w1p = params["fc1_w"] * scale
    b1p = (params["fc1_b"] - params["bn_mean"]) * scale + params["bn_beta"]

    x_flat = de_data.reshape(B, N * Cin)                   # row-major (m, i) flatten

    def vmem():
        return pl.BlockSpec(memory_space=pltpu.MemorySpace.VMEM)

    return pl.pallas_call(
        chebnet_fused_kernel,
        out_shape=(jax.ShapeDtypeStruct((B, N * Cout), jnp.float32),   # output_feature
                   jax.ShapeDtypeStruct((B, C), jnp.float32)),         # class_pred
        in_specs=[vmem() for _ in range(7)],
        out_specs=(vmem(), vmem()),
    )(x_flat, G, g_bias, w1p, b1p, params["fc2_w"], params["fc2_b"])


# ----------------------------------------------------------------------------
# Parameter construction (deterministic, shapes match the PyTorch __init__)
# ----------------------------------------------------------------------------
def init_params(key, in_c, hid_c, out_c, K, chan_num, class_num):
    ks = jax.random.split(key, 6)
    Kp1 = K + 1
    # conv1.weight: torch shape (K+1, 1, in_c, hid_c), xavier_normal_
    fan_in = 1 * in_c * hid_c
    fan_out = Kp1 * in_c * hid_c
    std = math.sqrt(2.0 / (fan_in + fan_out))
    conv1_w = std * jax.random.normal(ks[0], (Kp1, in_c, hid_c), jnp.float32)
    conv1_b = jnp.zeros((1, hid_c), jnp.float32)            # init.zeros_

    F1 = chan_num * out_c
    F2 = (chan_num // 4) * out_c
    bound1 = 1.0 / math.sqrt(F1)
    fc1_w = jax.random.uniform(ks[1], (F1, F2), jnp.float32, -bound1, bound1)
    fc1_b = jax.random.uniform(ks[2], (1, F2), jnp.float32, -bound1, bound1)
    bound2 = 1.0 / math.sqrt(F2)
    fc2_w = jax.random.uniform(ks[3], (F2, class_num), jnp.float32, -bound2, bound2)
    fc2_b = jax.random.uniform(ks[4], (1, class_num), jnp.float32, -bound2, bound2)

    # BatchNorm1d(F2) defaults (eval mode uses these running stats)
    bn_gamma = jnp.ones((1, F2), jnp.float32)
    bn_beta = jnp.zeros((1, F2), jnp.float32)
    bn_mean = jnp.zeros((1, F2), jnp.float32)
    bn_var = jnp.ones((1, F2), jnp.float32)

    # NOTE: Myweight_train and conv2 are defined in __init__ but never used in
    # ChebNet.forward -> intentionally not materialized.
    return dict(conv1_w=conv1_w, conv1_b=conv1_b,
                fc1_w=fc1_w, fc1_b=fc1_b, fc2_w=fc2_w, fc2_b=fc2_b,
                bn_gamma=bn_gamma, bn_beta=bn_beta, bn_mean=bn_mean, bn_var=bn_var)


# ----------------------------------------------------------------------------
# Pure-JAX reference (same math, plain XLA ops) for a correctness check
# ----------------------------------------------------------------------------
def reference_forward(params, de_data, graph):
    B, N, _ = de_data.shape
    Kp1 = params["conv1_w"].shape[0]
    lap = jnp.diag(jnp.sum(graph, axis=-1)) - graph
    t = [jnp.eye(N, dtype=jnp.float32)]
    if Kp1 > 1:
        t.append(lap)
    for _ in range(2, Kp1):
        t.append(2.0 * (lap @ t[-1]) - t[-2])
    t = jnp.stack(t)                                        # (K+1, N, N)
    conv = jnp.einsum("knm,bmi,kio->bno", t, de_data, params["conv1_w"])
    conv = jnp.maximum(conv + params["conv1_b"], 0.0)
    feat = conv.reshape(B, -1)
    h = feat @ params["fc1_w"] + params["fc1_b"]
    h = ((h - params["bn_mean"]) * jax.lax.rsqrt(params["bn_var"] + 1e-5)
         * params["bn_gamma"] + params["bn_beta"])
    h = jnp.maximum(h, 0.0)
    logits = h @ params["fc2_w"] + params["fc2_b"]
    return feat, jax.nn.softmax(logits, axis=1)


# ----------------------------------------------------------------------------
if __name__ == "__main__":
    B, chan_num, in_c, hid_c, out_c, K, class_num = 2, 16, 5, 8, 8, 3, 4
    # (forward requires hid_c == out_c so the conv output matches fc1's width)

    key = jax.random.PRNGKey(0)
    k_de, k_adj, k_par = jax.random.split(key, 3)

    de_data = jax.random.normal(k_de, (B, chan_num, in_c), jnp.float32)
    adj = jax.random.uniform(k_adj, (chan_num, chan_num), jnp.float32)
    graph = 0.5 * (adj + adj.T)                             # symmetric adjacency

    params = init_params(k_par, in_c, hid_c, out_c, K, chan_num, class_num)
    # Explicit tie between the stored weight tensor and the polynomial order:
    assert params["conv1_w"].shape[0] == K + 1, "conv weight leading dim must be K+1"

    output_feature, class_pred = jax.jit(chebnet_forward)(params, de_data, graph)
    jax.block_until_ready((output_feature, class_pred))

    ref_feat, ref_pred = reference_forward(params, de_data, graph)

    assert output_feature.shape == (B, chan_num * hid_c)
    assert class_pred.shape == (B, class_num)
    assert bool(jnp.all(jnp.isfinite(output_feature)))
    assert bool(jnp.all(jnp.isfinite(class_pred)))
    assert bool(jnp.allclose(output_feature, ref_feat, rtol=1e-3, atol=1e-2))
    assert bool(jnp.allclose(class_pred, ref_pred, rtol=1e-3, atol=1e-3))
    assert bool(jnp.allclose(jnp.sum(class_pred, axis=1), 1.0, atol=1e-4))

    print("KERNEL_OK")
</pallas_src>

<mosaic_0001>
module attributes {stable_mosaic.version = 11 : i64} {
  func.func @chebnet_fused_kernel(%arg0: memref<2x80xf32, #tpu.memory_space<vmem>>, %arg1: memref<80x128xf32, #tpu.memory_space<vmem>>, %arg2: memref<1x128xf32, #tpu.memory_space<vmem>>, %arg3: memref<128x32xf32, #tpu.memory_space<vmem>>, %arg4: memref<1x32xf32, #tpu.memory_space<vmem>>, %arg5: memref<32x4xf32, #tpu.memory_space<vmem>>, %arg6: memref<1x4xf32, #tpu.memory_space<vmem>>, %arg7: memref<2x128xf32, #tpu.memory_space<vmem>>, %arg8: memref<2x4xf32, #tpu.memory_space<vmem>>) attributes {dimension_semantics = [], scalar_prefetch = 0 : i64, scratch_operands = 0 : i64, tpu.core_type = #tpu.core_type<tc>} {
    %c0 = arith.constant 0 : index
    %c0_0 = arith.constant 0 : index
    %0 = vector.load %arg0[%c0, %c0_0] : memref<2x80xf32, #tpu.memory_space<vmem>>, vector<2x80xf32>
    %c0_1 = arith.constant 0 : index
    %c0_2 = arith.constant 0 : index
    %1 = vector.load %arg1[%c0_1, %c0_2] : memref<80x128xf32, #tpu.memory_space<vmem>>, vector<80x128xf32>
    %cst = arith.constant dense<0.000000e+00> : vector<2x128xf32>
    %2 = tpu.matmul %0, %1, %cst {dimension_numbers = #tpu.dot_dimension_numbers<[1], [0], [0], [1], [0, 0, 1, 1], [], []>} : vector<2x80xf32>, vector<80x128xf32>, vector<2x128xf32> -> vector<2x128xf32>
    %c0_3 = arith.constant 0 : index
    %c0_4 = arith.constant 0 : index
    %3 = vector.load %arg2[%c0_3, %c0_4] : memref<1x128xf32, #tpu.memory_space<vmem>>, vector<1x128xf32>
    %4 = vector.broadcast %3 : vector<1x128xf32> to vector<2x128xf32>
    %5 = arith.addf %2, %4 : vector<2x128xf32>
    %cst_5 = arith.constant 0.000000e+00 : f32
    %6 = vector.broadcast %cst_5 : f32 to vector<2x128xf32>
    %7 = arith.maximumf %5, %6 : vector<2x128xf32>
    %c0_6 = arith.constant 0 : index
    %c0_7 = arith.constant 0 : index
    %8 = vector.load %arg7[%c0_6, %c0_7] : memref<2x128xf32, #tpu.memory_space<vmem>>, vector<2x128xf32>
    tpu.vector_store %arg7[%c0_6, %c0_7], %7 {strides = array<i32>} : memref<2x128xf32, #tpu.memory_space<vmem>>, vector<2x128xf32>,
    %c0_8 = arith.constant 0 : index
    %c0_9 = arith.constant 0 : index
    %9 = vector.load %arg3[%c0_8, %c0_9] : memref<128x32xf32, #tpu.memory_space<vmem>>, vector<128x32xf32>
    %cst_10 = arith.constant dense<0.000000e+00> : vector<2x32xf32>
    %10 = tpu.matmul %7, %9, %cst_10 {dimension_numbers = #tpu.dot_dimension_numbers<[1], [0], [0], [1], [0, 0, 1, 1], [], []>} : vector<2x128xf32>, vector<128x32xf32>, vector<2x32xf32> -> vector<2x32xf32>
    %c0_11 = arith.constant 0 : index
    %c0_12 = arith.constant 0 : index
    %11 = vector.load %arg4[%c0_11, %c0_12] : memref<1x32xf32, #tpu.memory_space<vmem>>, vector<1x32xf32>
    %12 = vector.broadcast %11 : vector<1x32xf32> to vector<2x32xf32>
    %13 = arith.addf %10, %12 : vector<2x32xf32>
    %cst_13 = arith.constant 0.000000e+00 : f32
    %14 = vector.broadcast %cst_13 : f32 to vector<2x32xf32>
    %15 = arith.maximumf %13, %14 : vector<2x32xf32>
    %c0_14 = arith.constant 0 : index
    %c0_15 = arith.constant 0 : index
    %16 = vector.load %arg5[%c0_14, %c0_15] : memref<32x4xf32, #tpu.memory_space<vmem>>, vector<32x4xf32>
    %cst_16 = arith.constant dense<0.000000e+00> : vector<2x4xf32>
    %17 = tpu.matmul %15, %16, %cst_16 {dimension_numbers = #tpu.dot_dimension_numbers<[1], [0], [0], [1], [0, 0, 1, 1], [], []>} : vector<2x32xf32>, vector<32x4xf32>, vector<2x4xf32> -> vector<2x4xf32>
    %c0_17 = arith.constant 0 : index
    %c0_18 = arith.constant 0 : index
    %18 = vector.load %arg6[%c0_17, %c0_18] : memref<1x4xf32, #tpu.memory_space<vmem>>, vector<1x4xf32>
    %19 = vector.broadcast %18 : vector<1x4xf32> to vector<2x4xf32>
    %20 = arith.addf %17, %19 : vector<2x4xf32>
    %cst_19 = arith.constant dense<0xFF800000> : vector<2xf32>
    %21 = vector.multi_reduction <maximumf>, %20, %cst_19 [1] : vector<2x4xf32> to vector<2xf32>
    %22 = vector.shape_cast %21 : vector<2xf32> to vector<2x1xf32>
    %23 = vector.broadcast %22 : vector<2x1xf32> to vector<2x4xf32>
    %24 = arith.subf %20, %23 : vector<2x4xf32>
    %25 = math.exp %24 : vector<2x4xf32>
    %cst_20 = arith.constant dense<0.000000e+00> : vector<2xf32>
    %26 = vector.multi_reduction <add>, %25, %cst_20 [1] : vector<2x4xf32> to vector<2xf32>
    %27 = vector.shape_cast %26 : vector<2xf32> to vector<2x1xf32>
    %28 = vector.broadcast %27 : vector<2x1xf32> to vector<2x4xf32>
    %29 = arith.divf %25, %28 : vector<2x4xf32>
    %c0_21 = arith.constant 0 : index
    %c0_22 = arith.constant 0 : index
    %30 = vector.load %arg8[%c0_21, %c0_22] : memref<2x4xf32, #tpu.memory_space<vmem>>, vector<2x4xf32>
    tpu.vector_store %arg8[%c0_21, %c0_22], %29 {strides = array<i32>} : memref<2x4xf32, #tpu.memory_space<vmem>>, vector<2x4xf32>,
    return
  }
}

</mosaic_0001>

<bundles_post_ra>
// kernel: chebnet_forward.1
= control target key start
LH: loop header
LB: loop body
LE: loop exit
PB: predicated region body
PF: predicated region fallthrough
CT: control target
= control target key end

     0   :  { %14 = vsyncpa [#allocation3], 0  ;;  %v553_v3 = vmov 0.0|0.0   ;;  %vm554_vm0 = vmmov 0   ;;  %v555_v6 = vmov 0.0   ;;  %s750_s0 = inlined_call_operand.vmem [shape: f32[2,80], index: 0, kind: input, shape index: {}]   ;;  %s751_s1 = inlined_call_operand.vmem [shape: f32[80,128], index: 1, kind: input, shape index: {}]   ;;  %s752_s2 = inlined_call_operand.vmem [shape: f32[1,128], index: 2, kind: input, shape index: {}]   ;;  %s753_s3 = inlined_call_operand.vmem [shape: f32[128,32], index: 3, kind: input, shape index: {}]   ;;  %s754_s4 = inlined_call_operand.vmem [shape: f32[1,32], index: 4, kind: input, shape index: {}]   ;;  %s755_s5 = inlined_call_operand.vmem [shape: f32[32,4], index: 5, kind: input, shape index: {}]   ;;  %s756_s6 = inlined_call_operand.vmem [shape: f32[1,4], index: 6, kind: input, shape index: {}]   ;;  %s757_s7 = inlined_call_operand.hbm [shape: f32[2,128], index: 7, kind: output, shape index: {0}]   ;;  %s758_s8 = inlined_call_operand.hbm [shape: f32[2,4], index: 8, kind: output, shape index: {1}]  }
   0x1   :  { %v31_v0 = vld [vmem:[%s751_s1] sm:$0xff]  ;;  %v32_v1 = vld [vmem:[%s751_s1 + $0x8] sm:$0xff]  ;;  %v33_v2 = vld [vmem:[%s751_s1 + $0x10] sm:$0xff]  ;;  %451 = vmatprep.subr.bf16.mxu0 %v553_v3  ;;  %402 = vmatprep.mubr.msk.f32.mxu0 %vm554_vm0, %v555_v6 }
   0x2   :  { %v452_v4 = vpack.c.bf16 %v32_v1, %v31_v0  ;;  %v34_v5 = vld [vmem:[%s751_s1 + $0x18] sm:$0xff]  ;;  %466 = vmatprep.subr.bf16.mxu1 %v553_v3  ;;  %437 = vmatprep.mubr.msk.f32.mxu1 %vm554_vm0, %v555_v6  ;;  %v35_v8 = vld [vmem:[%s751_s1 + $0x20] sm:$0xff]  ;;  %v36_v9 = vld [vmem:[%s751_s1 + $0x28] sm:$0xff] }
   0x3   :  { %v455_v7 = vpack.c.bf16 %v34_v5, %v33_v2  ;;  %v124_v10 = vld [vmem:[%s753_s3] sm:$0xff]  ;;  %v125_v11 = vld [vmem:[%s753_s3 + $0x8] sm:$0xff]  ;;  %v126_v12 = vld [vmem:[%s753_s3 + $0x10] sm:$0xff]  ;;  %v458_v15 = vpack.c.bf16 %v36_v9, %v35_v8 }
   0x4   :  { %453 = vmatpush3.bf16.msra.mxu0 %v452_v4  ;;  %v127_v13 = vld [vmem:[%s753_s3 + $0x18] sm:$0xff]  ;;  %v467_v14 = vpack.c.bf16 %v125_v11, %v124_v10  ;;  %v37_v16 = vld [vmem:[%s751_s1 + $0x30] sm:$0xff]  ;;  %v128_v19 = vld [vmem:[%s753_s3 + $0x20] sm:$0xff] }
   0x5   :  { %454 = vmatprep.subr.bf16.mxu0 %v553_v3  ;;  %v38_v17 = vld [vmem:[%s751_s1 + $0x38] sm:$0xff]  ;;  %v470_v18 = vpack.c.bf16 %v127_v13, %v126_v12  ;;  %v129_v20 = vld [vmem:[%s753_s3 + $0x28] sm:$0xff] }
   0x6   :  { %468 = vmatpush3.bf16.msra.mxu1 %v467_v14 }
   0x7   :  { %469 = vmatprep.subr.bf16.mxu1 %v553_v3 }
   0x8   :  { %456 = vmatpush3.bf16.msra.mxu0 %v455_v7 }
   0x9   :  { %457 = vmatprep.subr.bf16.mxu0 %v553_v3 }
   0xa   :  { %15 = vsyncpa [#allocation5], 0  ;;  %v461_v21 = vpack.c.bf16 %v38_v17, %v37_v16  ;;  %v39_v22 = vld [vmem:[%s751_s1 + $0x40] sm:$0xff]  ;;  %471 = vmatpush3.bf16.msra.mxu1 %v470_v18  ;;  %v473_v23 = vpack.c.bf16 %v129_v20, %v128_v19  ;;  %v40_v24 = vld [vmem:[%s751_s1 + $0x48] sm:$0xff]  ;;  %vm48_vm1 = vcmask 654336   ;;  %vm229_vm2 = vcmask 261120  }
   0xb   :  { %472 = vmatprep.subr.bf16.mxu1 %v553_v3  ;;  %v130_v25 = vld [vmem:[%s753_s3 + $0x30] sm:$0xff]  ;;  %v131_v26 = vld [vmem:[%s753_s3 + $0x38] sm:$0xff]  ;;  %v464_v27 = vpack.c.bf16 %v40_v24, %v39_v22  ;;  %v132_v29 = vld [vmem:[%s753_s3 + $0x40] sm:$0xff]  ;;  %vm303_vm3 = vcmask 25600  }
   0xc   :  { %459 = vmatpush3.bf16.msra.mxu0 %v458_v15  ;;  %v476_v28 = vpack.c.bf16 %v131_v26, %v130_v25  ;;  %v133_v30 = vld [vmem:[%s753_s3 + $0x48] sm:$0xff]  ;;  %v30_v31 = vld [vmem:[%s750_s0] sm:$0x3]  ;;  %v134_v33 = vld [vmem:[%s753_s3 + $0x50] sm:$0xff] }
   0xd   :  { %460 = vmatprep.subr.bf16.mxu0 %v553_v3  ;;  %v479_v32 = vpack.c.bf16 %v133_v30, %v132_v29  ;;  %v135_v34 = vld [vmem:[%s753_s3 + $0x58] sm:$0xff]  ;;  %v136_v36 = vld [vmem:[%s753_s3 + $0x60] sm:$0xff]  ;;  %v137_v37 = vld [vmem:[%s753_s3 + $0x68] sm:$0xff] }
   0xe   :  { %474 = vmatpush3.bf16.msra.mxu1 %v473_v23  ;;  %v482_v35 = vpack.c.bf16 %v135_v34, %v134_v33  ;;  %v485_v38 = vpack.c.bf16 %v137_v37, %v136_v36  ;;  %v138_v39 = vld [vmem:[%s753_s3 + $0x70] sm:$0xff]  ;;  %v139_v40 = vld [vmem:[%s753_s3 + $0x78] sm:$0xff]  ;;  %v218_v42 = vld [vmem:[%s755_s5] sm:$0xff] }
   0xf   :  { %475 = vmatprep.subr.bf16.mxu1 %v553_v3  ;;  %v488_v41 = vpack.c.bf16 %v139_v40, %v138_v39  ;;  %v219_v43 = vld [vmem:[%s755_s5 + $0x8] sm:$0xff]  ;;  %v344_v45 = vld [vmem:[%s752_s2] ss:$0 sm:$0xff]  ;;  %v220_v50 = vld [vmem:[%s755_s5 + $0x10] sm:$0xff] }
  0x10   :  { %462 = vmatpush3.bf16.msra.mxu0 %v461_v21  ;;  %v491_v44 = vpack.c.bf16 %v219_v43, %v218_v42  ;;  %v221_v51 = vld [vmem:[%s755_s5 + $0x18] sm:$0xff]  ;;  %v346_v53 = vld [vmem:[%s754_s4] ss:$0 sm:$0xff]  ;;  %s556_s4 = smov [#allocation2]  }
  0x11   :  { %463 = vmatprep.subr.bf16.mxu0 %v553_v3  ;;  %v494_v52 = vpack.c.bf16 %v221_v51, %v220_v50  ;;  %v347_v58 = vld [vmem:[%s756_s6] ss:$0 sm:$0xff]  ;;  %s322_s5 = sshll.u32 %s556_s4, 4  ;;  %s323_s5 = int_to_ptr.vmem [resolvable:$true] %s322_s5 }
  0x12   :  { %477 = vmatpush3.bf16.msra.mxu1 %v476_v28  ;;  %s505_s24 = scalar_lea.vmem %s323_s5, 32  ;;  %p510_p1 = scmp.lt.s32.totalorder %s323_s5, %s323_s5 }
  0x13   :  { %478 = vmatprep.subr.bf16.mxu1 %v553_v3  ;;  %p506_p0 = scmp.ne.s32.totalorder %s323_s5, %s505_s24  ;;  %p511_p2 = scmp.lt.s32.totalorder %s505_s24, %s505_s24 }
  0x14   :  { %465 = vmatpush3.bf16.msra.mxu0 %v464_v27 }
  0x15   :  { %490 = vmatprep.subr.bf16.mxu0 %v553_v3  ;;  %p512_p3 = por %p511_p2, %p510_p1 }
  0x16   :  { %480 = vmatpush3.bf16.msra.mxu1 %v479_v32 }
  0x17   :  { %403 = vmatmul.mubr.msk.f32.vlgmr.msra.gmra.mrb[0].mxu0 %vm48_vm1, %v30_v31  ;;  %481 = vmatprep.subr.bf16.mxu1 %v553_v3  ;;  %p513_p4 = pnand %p512_p3, %p506_p0 }
  0x18   :  { %448 = vmatprep.mubr.msk.f32.mxu0 %vm554_vm0, %v555_v6  ;;  %492 = vmatpush3.bf16.msra.mxu0 %v491_v44 }
  0x19   :  { %493 = vmatprep.subr.bf16.mxu0 %v553_v3 }
  0x1a   :  { %483 = vmatpush3.bf16.msra.mxu1 %v482_v35 }
  0x1b   :  { %484 = vmatprep.subr.bf16.mxu1 %v553_v3 }
  0x1c   :  { %495 = vmatpush3.bf16.msra.mxu0 %v494_v52 }
  0x1e   :  { %486 = vmatpush3.bf16.msra.mxu1 %v485_v38 }
  0x1f   :  { %487 = vmatprep.subr.bf16.mxu1 %v553_v3 }
  0x22   :  { %489 = vmatpush3.bf16.msra.mxu1 %v488_v41 }
  0xea   :  { %v118_v46 = vpop.f32.mrb[0].mxu0 }
  0xeb   :  { %v119_v47 = vadd.f32 %v344_v45, %v118_v46  ;;  %v404_v48 = vpop.f32.mrb[1].mxu0 }
  0xed   :  { %v122_v49 = vmax.f32 %v119_v47, 0.0 }
  0xef   :  { %123 = vst [vmem:[#allocation2] sm:$0x3] %v122_v49  ;;  %438 = vmatmul.mubr.f32.vlgmr.msra.gmra.mrb[0].mxu1 %v122_v49 }
 0x1c2   :  { %v213_v54 = vpop.f32.mrb[0].mxu1 }
 0x1c3   :  { %v214_v55 = vadd.f32 %v346_v53, %v213_v54  ;;  %v439_v56 = vpop.f32.mrb[1].mxu1 }
 0x1c5   :  { %v217_v57 = vmax.f32 %v214_v55, 0.0 }
 0x1c7   :  { %449 = vmatmul.mubr.msk.f32.vlgmr.msra.gmra.mrb[2].mxu0 %vm229_vm2, %v217_v57 }
 0x29a   :  { %v299_v59 = vpop.f32.mrb[2].mxu0 }
 0x29b   :  { %v300_v60 = vadd.f32 %v347_v58, %v299_v59  ;;  %v450_v61 = vpop.f32.mrb[3].mxu0 }
 0x29d   :  { %v304_v62 = vsel %vm303_vm3, %v300_v60, -inf }
 0x29e   :  { %305 = vmax.xlane.f32.xlu0 %v304_v62 }
 0x32b   :  { %v306_v63 = vpop.xlane.xlu0 %305 }
 0x32c   :  { %v307_v0 = vsub.f32 %v300_v60, %v306_v63 }
 0x32e   :  { %v308_v1 = vmul.f32 1.442695, %v307_v0 }
 0x330   :  { %501 = vpow2.f32 %v308_v1 }
 0x33a   :  { %v502_v2 = vpop.eup %501 }
 0x33b   :  { %v310_v3 = vsel %vm303_vm3, %v502_v2, 0.0 }
 0x33c   :  { %311 = vadd.xlane.f32.xlu0 %v310_v3 }
 0x33d   :  { %516 = shalt.err (!%p513_p4)
}
 0x33e   :  { %s517_s26 = scalar_lea.hbm %s757_s7, 32 }
 0x33f   :  { %p518_p5 = scmp.ne.s32.totalorder %s757_s7, %s517_s26  ;;  %p521_p6 = scmp.lt.u32.totalorder %s517_s26, %s757_s7 }
 0x341   :  { %p523_p7 = pnand %p521_p6, %p518_p5 }
 0x343   :  { %526 = shalt.err (!%p523_p7)
}
 0x344   :  { %325 = dma.vmem_to_hbm [thread:$0]  %s323_s5, 32, %s757_s7, [#allocation3]  }
 0x345   :  { %s557_s10 = smov [#allocation4]  }
 0x346   :  { %s332_s11 = sshll.u32 %s557_s10, 4  ;;  %s333_s11 = int_to_ptr.vmem [resolvable:$true] %s332_s11 }
 0x347   :  { %s527_s12 = scalar_lea.vmem %s333_s11, 32  ;;  %p532_p9 = scmp.lt.s32.totalorder %s333_s11, %s333_s11 }
 0x348   :  { %p528_p8 = scmp.ne.s32.totalorder %s333_s11, %s527_s12  ;;  %p533_p10 = scmp.lt.s32.totalorder %s527_s12, %s527_s12 }
 0x34a   :  { %p534_p11 = por %p533_p10, %p532_p9 }
 0x34c   :  { %p535_p12 = pnand %p534_p11, %p528_p8 }
 0x3c9   :  { %v312_v4 = vpop.xlane.xlu0 %311 }
 0x3ca   :  { %503 = vrcp.f32 %v312_v4 }
 0x3d4   :  { %v504_v5 = vpop.eup %503 }
 0x3d5   :  { %v314_v6 = vmul.f32 %v504_v5, %v502_v2 }
 0x3d7   :  { %315 = vst.msk [vmem:[#allocation4] sm:$0x3] %vm303_vm3, %v314_v6 }
 0x3d8   :  { %538 = shalt.err (!%p535_p12)
}
 0x3d9   :  { %s539_s7 = scalar_lea.hbm %s758_s8, 32 }
 0x3da   :  { %p540_p13 = scmp.ne.s32.totalorder %s758_s8, %s539_s7  ;;  %p543_p0 = scmp.lt.u32.totalorder %s539_s7, %s758_s8 }
 0x3dc   :  { %p545_p1 = pnand %p543_p0, %p540_p13 }
 0x3de   :  { %548 = shalt.err (!%p545_p1)
}
 0x3df   :  { %335 = dma.vmem_to_hbm [thread:$0]  %s333_s11, 32, %s758_s8, [#allocation5]  }
 0x3e0   :  { %549 = dma.done.wait [#allocation3], 32  }
 0x3e1   :  { %550 = vsyncadd [#allocation3], 4294967264 }
 0x3e2   :  { %551 = dma.done.wait [#allocation5], 32  }
 0x3e3   :  { %552 = vsyncadd [#allocation5], 4294967264 }
 0x3e4   :  { %342 = vsyncpa [#allocation3], 1 }
 0x3e5   :  { %343 = vsyncpa [#allocation5], 1 }

</bundles_post_ra>
